<compile_context>
chip_gen: v6e
topology: v6e:2x2x1
jax: 0.10.0
libtpu: 0.0.40
codegen_flags: <defaults>
</compile_context>

<pallas_src>
import functools

import jax
import jax.numpy as jnp
from jax.experimental import pallas as pl
from jax.experimental.pallas import tpu as pltpu


def _round_up(v, m):
    return ((v + m - 1) // m) * m


def _sublane_pad(n, dtype):
    # Sub-32-bit dtypes pack along sublanes: bf16 -> 16, int8/fp8 -> 32.
    packing = max(1, 4 // jnp.dtype(dtype).itemsize)
    return _round_up(max(int(n), 1), 8 * packing)


def _vmem_capacity_bytes():
    try:
        cap = int(pltpu.get_tpu_info().vmem_capacity_bytes)
        if cap > 0:
            return cap
    except Exception:
        pass
    return 64 * 1024 * 1024       # v7x floor -> safe on every generation


def _mdn_kernel(c_ref, pinv_ref, y_ref, beta_ref, out_ref, nbeta_ref, *,
                momentum):
    # c_ref     : (N, N)   scale * X_masked @ cf_kernel @ X^T  (matmul dtype)
    # pinv_ref  : (K, N)   cf_kernel @ X^T                     (matmul dtype)
    # y_ref     : (N, TF)  tile of flattened features (native x dtype)
    # beta_ref  : (K, TF)  tile of the running beta buffer (beta dtype)
    # out_ref   : (N, TF)  residual tile (native x dtype)
    # nbeta_ref : (K, TF)  updated beta tile (beta dtype)
    y = y_ref[...]                                              # native dtype

    # residual = Y - corr with corr = scale * X[:,1:] @ B[1:] folded into C.
    # The identity / pass-through part of Y is subtracted in f32 exactly;
    # only the small correction goes through the (possibly low-prec) matmul.
    corr = jnp.dot(c_ref[...], y, preferred_element_type=jnp.float32)
    out_ref[...] = (y.astype(jnp.float32) - corr).astype(out_ref.dtype)

    # B = pinv @ Y, fused EMA:  new_beta = (1 - m) * beta + m * B  (f32 acc).
    b = jnp.dot(pinv_ref[...], y, preferred_element_type=jnp.float32)
    nbeta_ref[...] = (
        jnp.float32(1.0 - momentum) * beta_ref[...].astype(jnp.float32)
        + jnp.float32(momentum) * b
    ).astype(nbeta_ref.dtype)


def metadata_norm_forward(x, cfs, cf_kernel, beta, *, dataset_size,
                          momentum=0.1, training=True):
    """MetadataNorm forward. Returns (residual, new_beta)."""
    if momentum is None:
        momentum = 0.5                       # matches the PyTorch module

    N = x.shape[0]
    F = 1
    for d in x.shape[1:]:
        F *= d
    K = cf_kernel.shape[0]
    scale = float(dataset_size) / float(N)

    y = x.reshape(N, F)                      # keep native dtype (no extra pass)

    if not training:
        # Eval path: B = beta, no buffer update (tiny matmul, not hot path).
        y_r = jnp.dot(cfs[:, 1:].astype(jnp.float32),
                      beta[1:].astype(jnp.float32))
        residual = (y.astype(jnp.float32) - scale * y_r).reshape(x.shape)
        return residual.astype(x.dtype), beta

    # ---- tiny constant matrices, computed once in the wrapper -------------
    X = cfs.astype(jnp.float32)                              # (N, K)
    cfk = cf_kernel.astype(jnp.float32)                      # (K, K)
    pinv = cfk @ X.T                                         # (K, N)
    X_masked = X.at[:, 0].set(0.0)                           # == X[:, 1:] padded
    corr_mat = jnp.float32(scale) * (X_masked @ pinv)        # (N, N)

    # Matmul-operand dtype for the small matrices: native low-precision if x
    # is a sub-32-bit float (MXU mixed-precision path), else f32.
    x_dt = jnp.dtype(x.dtype)
    if jnp.issubdtype(x_dt, jnp.floating) and x_dt.itemsize < 4:
        small_dt = x.dtype
    else:
        small_dt = jnp.float32
    corr_mat = corr_mat.astype(small_dt)
    pinv_in = pinv.astype(small_dt)

    # ---- lane-dense F-tile selection (honest VMEM budget, >= 128 lanes) ---
    x_bytes = x_dt.itemsize
    b_bytes = jnp.dtype(beta.dtype).itemsize
    n_pad_x = _sublane_pad(N, x.dtype)
    k_pad_b = _sublane_pad(K, beta.dtype)
    n_pad_f = _round_up(N, 8)
    k_pad_f = _round_up(K, 8)
    # Per lane-column bytes: double-buffered streamed I/O plus the f32
    # intermediates the kernel materializes (Y upcast, corr, B, EMA temp).
    per_col = (2 * (2 * n_pad_x * x_bytes)          # Y in + residual out (x2 buf)
               + 2 * (2 * k_pad_b * b_bytes)        # beta in + new_beta out
               + 2 * n_pad_f * 4                    # corr + Y upcast (f32)
               + 2 * k_pad_f * 4)                   # B + EMA temp (f32)
    small_itemsize = jnp.dtype(small_dt).itemsize
    small_bytes = 2 * _round_up(N, 128) * small_itemsize * (
        _sublane_pad(N, small_dt) + _sublane_pad(K, small_dt))

    vmem_cap = _vmem_capacity_bytes()
    budget = min(vmem_cap // 2, 40 * 1024 * 1024)
    tf_cap = max(128, ((budget - small_bytes) // per_col) // 128 * 128)

    if F < 256:
        tf = F                                # full-extent block (any F legal)
    else:
        tf = min(tf_cap, _round_up(F, 128))
        # Keep >= 2 grid steps: megacore sharding on v7x + in/out DMA overlap.
        tf = max(128, min(tf, _round_up((F + 1) // 2, 128)))
    grid = (pl.cdiv(F, tf),)

    vmem_limit = int(max(32 * 1024 * 1024,
                         min(vmem_cap - (8 << 20), budget + (16 << 20))))

    kernel = functools.partial(_mdn_kernel, momentum=float(momentum))

    cost = pl.CostEstimate(
        flops=2 * (N + K) * N * F + 4 * K * F + N * F,
        transcendentals=0,
        bytes_accessed=(2 * N * F * x_bytes + 2 * K * F * b_bytes
                        + (N * N + K * N) * small_itemsize),
    )

    residual_flat, new_beta = pl.pallas_call(
        kernel,
        out_shape=(
            jax.ShapeDtypeStruct((N, F), x.dtype),
            jax.ShapeDtypeStruct((K, F), beta.dtype),
        ),
        grid_spec=pltpu.PrefetchScalarGridSpec(
            num_scalar_prefetch=0,
            grid=grid,
            in_specs=[
                pl.BlockSpec((N, N), lambda j: (0, 0)),    # corr matrix (repl.)
                pl.BlockSpec((K, N), lambda j: (0, 0)),    # pinv (replicated)
                pl.BlockSpec((N, tf), lambda j: (0, j)),   # Y tile
                pl.BlockSpec((K, tf), lambda j: (0, j)),   # beta tile
            ],
            out_specs=[
                pl.BlockSpec((N, tf), lambda j: (0, j)),   # residual tile
                pl.BlockSpec((K, tf), lambda j: (0, j)),   # new_beta tile
            ],
        ),
        input_output_aliases={3: 1},                       # beta -> new_beta
        compiler_params=pltpu.CompilerParams(
            dimension_semantics=("parallel",),
            vmem_limit_bytes=vmem_limit),
        cost_estimate=cost,
    )(corr_mat, pinv_in, y, beta)

    residual = residual_flat.reshape(x.shape)
    return residual, new_beta


def _reference_forward(x, cfs, cf_kernel, beta, *, dataset_size, momentum):
    """Pure-JAX reference mirroring the PyTorch training forward."""
    N = x.shape[0]
    y = x.reshape(N, -1).astype(jnp.float32)
    scale = dataset_size / N
    pinv = cf_kernel @ cfs.T
    B = pinv @ y
    new_beta = (1.0 - momentum) * beta + momentum * B
    y_r = cfs[:, 1:] @ B[1:]
    residual = (y - scale * y_r).reshape(x.shape)
    return residual, new_beta


if __name__ == "__main__":
    key = jax.random.PRNGKey(0)
    k_x, k_cfs, k_ds = jax.random.split(key, 3)

    # Small shapes consistent with the module.
    batch_size = 2
    C, H, W = 4, 16, 16
    kernel_dim = 2            # e.g. [intercept, confounder]
    dataset_size = 100
    momentum = 0.1

    x = jax.random.normal(k_x, (batch_size, C, H, W), dtype=jnp.float32)

    # Deterministic confounder design matrix for the whole "dataset":
    # column 0 = intercept, column 1 = a confounder variable.
    cf_raw = jax.random.normal(k_ds, (dataset_size, kernel_dim - 1),
                               dtype=jnp.float32)
    X_ds = jnp.concatenate(
        [jnp.ones((dataset_size, 1), jnp.float32), cf_raw], axis=1)
    cf_kernel = jnp.linalg.inv(X_ds.T @ X_ds)          # (K, K)

    # Per-batch confounders (the module's self.cfs, randn init).
    cfs = jax.random.normal(k_cfs, (batch_size, kernel_dim), dtype=jnp.float32)

    num_features = C * H * W
    beta = jnp.zeros((kernel_dim, num_features), dtype=jnp.float32)

    # Compute the reference BEFORE the kernel call (beta is aliased into
    # new_beta inside the pallas_call).
    ref_res, ref_beta = _reference_forward(
        x, cfs, cf_kernel, beta, dataset_size=dataset_size, momentum=momentum)
    ref_res = jax.block_until_ready(ref_res)
    ref_beta = jax.block_until_ready(ref_beta)

    residual, new_beta = metadata_norm_forward(
        x, cfs, cf_kernel, beta,
        dataset_size=dataset_size, momentum=momentum, training=True)
    jax.block_until_ready(residual)
    jax.block_until_ready(new_beta)

    assert jnp.allclose(residual, ref_res, atol=1e-4, rtol=1e-4)
    assert jnp.allclose(new_beta, ref_beta, atol=1e-4, rtol=1e-4)

    # Eval path sanity (B = beta, no buffer update).
    res_eval, beta_eval = metadata_norm_forward(
        x, cfs, cf_kernel, new_beta,
        dataset_size=dataset_size, momentum=momentum, training=False)
    jax.block_until_ready(res_eval)
    y_flat = x.reshape(batch_size, -1)
    ref_eval = (y_flat - (dataset_size / batch_size)
                * (cfs[:, 1:] @ new_beta[1:])).reshape(x.shape)
    assert jnp.allclose(res_eval, ref_eval, atol=1e-4, rtol=1e-4)

    print("KERNEL_OK")
</pallas_src>

<mosaic_0001>
module attributes {stable_mosaic.version = 11 : i64} {
  func.func @_mdn_kernel(%arg0: i32, %arg1: memref<2x2xf32, #tpu.memory_space<vmem>>, %arg2: memref<2x2xf32, #tpu.memory_space<vmem>>, %arg3: memref<2x512xf32, #tpu.memory_space<vmem>>, %arg4: memref<2x512xf32, #tpu.memory_space<vmem>>, %arg5: memref<2x512xf32, #tpu.memory_space<vmem>>, %arg6: memref<2x512xf32, #tpu.memory_space<vmem>>) attributes {dimension_semantics = [#tpu.dimension_semantics<parallel>], iteration_bounds = array<i64: 2>, scalar_prefetch = 0 : i64, scratch_operands = 0 : i64, tpu.core_type = #tpu.core_type<tc>, window_params = [{pipeline_mode = #tpu.pipeline_mode<synchronous>, transform_indices = @transform_0, window_bounds = array<i64: 2, 2>}, {pipeline_mode = #tpu.pipeline_mode<synchronous>, transform_indices = @transform_1, window_bounds = array<i64: 2, 2>}, {transform_indices = @transform_2, window_bounds = array<i64: 2, 512>}, {transform_indices = @transform_3, window_bounds = array<i64: 2, 512>}, {transform_indices = @transform_4, window_bounds = array<i64: 2, 512>}, {transform_indices = @transform_5, window_bounds = array<i64: 2, 512>}]} {
    %c0 = arith.constant 0 : index
    %c0_0 = arith.constant 0 : index
    %0 = vector.load %arg3[%c0, %c0_0] : memref<2x512xf32, #tpu.memory_space<vmem>>, vector<2x512xf32>
    %c0_1 = arith.constant 0 : index
    %c0_2 = arith.constant 0 : index
    %1 = vector.load %arg1[%c0_1, %c0_2] : memref<2x2xf32, #tpu.memory_space<vmem>>, vector<2x2xf32>
    %cst = arith.constant dense<0.000000e+00> : vector<2x512xf32>
    %2 = tpu.matmul %1, %0, %cst {dimension_numbers = #tpu.dot_dimension_numbers<[1], [0], [0], [1], [0, 0, 1, 1], [], []>} : vector<2x2xf32>, vector<2x512xf32>, vector<2x512xf32> -> vector<2x512xf32>
    %3 = arith.subf %0, %2 : vector<2x512xf32>
    %c0_3 = arith.constant 0 : index
    %c0_4 = arith.constant 0 : index
    %4 = vector.load %arg5[%c0_3, %c0_4] : memref<2x512xf32, #tpu.memory_space<vmem>>, vector<2x512xf32>
    tpu.vector_store %arg5[%c0_3, %c0_4], %3 {strides = array<i32>} : memref<2x512xf32, #tpu.memory_space<vmem>>, vector<2x512xf32>,
    %c0_5 = arith.constant 0 : index
    %c0_6 = arith.constant 0 : index
    %5 = vector.load %arg2[%c0_5, %c0_6] : memref<2x2xf32, #tpu.memory_space<vmem>>, vector<2x2xf32>
    %cst_7 = arith.constant dense<0.000000e+00> : vector<2x512xf32>
    %6 = tpu.matmul %5, %0, %cst_7 {dimension_numbers = #tpu.dot_dimension_numbers<[1], [0], [0], [1], [0, 0, 1, 1], [], []>} : vector<2x2xf32>, vector<2x512xf32>, vector<2x512xf32> -> vector<2x512xf32>
    %c0_8 = arith.constant 0 : index
    %c0_9 = arith.constant 0 : index
    %7 = vector.load %arg4[%c0_8, %c0_9] : memref<2x512xf32, #tpu.memory_space<vmem>>, vector<2x512xf32>
    %cst_10 = arith.constant 0.899999976 : f32
    %8 = vector.broadcast %cst_10 : f32 to vector<2x512xf32>
    %9 = arith.mulf %8, %7 : vector<2x512xf32>
    %cst_11 = arith.constant 1.000000e-01 : f32
    %10 = vector.broadcast %cst_11 : f32 to vector<2x512xf32>
    %11 = arith.mulf %10, %6 : vector<2x512xf32>
    %12 = arith.addf %9, %11 : vector<2x512xf32>
    %c0_12 = arith.constant 0 : index
    %c0_13 = arith.constant 0 : index
    %13 = vector.load %arg6[%c0_12, %c0_13] : memref<2x512xf32, #tpu.memory_space<vmem>>, vector<2x512xf32>
    tpu.vector_store %arg6[%c0_12, %c0_13], %12 {strides = array<i32>} : memref<2x512xf32, #tpu.memory_space<vmem>>, vector<2x512xf32>,
    return
  }
  func.func @transform_0(%arg0: i32) -> (i32, i32) {
    %c0_i32 = arith.constant 0 : i32
    %c0_i32_0 = arith.constant 0 : i32
    %c0_i32_1 = arith.constant 0 : i32
    return %c0_i32, %c0_i32_0 : i32, i32
  }
  func.func @transform_1(%arg0: i32) -> (i32, i32) {
    %c0_i32 = arith.constant 0 : i32
    %c0_i32_0 = arith.constant 0 : i32
    %c0_i32_1 = arith.constant 0 : i32
    return %c0_i32, %c0_i32_0 : i32, i32
  }
  func.func @transform_2(%arg0: i32) -> (i32, i32) {
    %c0_i32 = arith.constant 0 : i32
    %c0_i32_0 = arith.constant 0 : i32
    return %c0_i32, %arg0 : i32, i32
  }
  func.func @transform_3(%arg0: i32) -> (i32, i32) {
    %c0_i32 = arith.constant 0 : i32
    %c0_i32_0 = arith.constant 0 : i32
    return %c0_i32, %arg0 : i32, i32
  }
  func.func @transform_4(%arg0: i32) -> (i32, i32) {
    %c0_i32 = arith.constant 0 : i32
    %c0_i32_0 = arith.constant 0 : i32
    return %c0_i32, %arg0 : i32, i32
  }
  func.func @transform_5(%arg0: i32) -> (i32, i32) {
    %c0_i32 = arith.constant 0 : i32
    %c0_i32_0 = arith.constant 0 : i32
    return %c0_i32, %arg0 : i32, i32
  }
}

</mosaic_0001>

<bundles_post_ra>
// kernel: tpu_custom_call.1
= control target key start
LH: loop header
LB: loop body
LE: loop exit
PB: predicated region body
PF: predicated region fallthrough
CT: control target
= control target key end

     0   :  { %11 = vsyncpa [#allocation3], 0  ;;  %s1257_s0 = inlined_call_operand.vmem [shape: f32[2,2], index: 0, kind: input, shape index: {}]   ;;  %s1258_s1 = inlined_call_operand.vmem [shape: f32[2,2], index: 1, kind: input, shape index: {}]   ;;  %s1259_s2 = inlined_call_operand.vmem [shape: f32[2,1024], index: 2, kind: input, shape index: {}]   ;;  %s1260_s3 = inlined_call_operand.hbm [shape: f32[2,1024], index: 3, kind: input, shape index: {}, may-alias: {3,5}]   ;;  %s1261_s4 = inlined_call_operand.hbm [shape: f32[2,1024], index: 4, kind: output, shape index: {0}]   ;;  %s1262_s5 = inlined_call_operand.hbm [shape: f32[2,1024], index: 5, kind: output, shape index: {1}, may-alias: {3,5}]  }
   0x1   :  { %13 = vsyncpa [#allocation3 + $0x1], 0 }
   0x2   :  { %14 = vsyncpa [#allocation4], 0 }
   0x3   :  { %16 = vsyncpa [#allocation4 + $0x1], 0 }
   0x4   :  { %17 = vsyncpa [#allocation7], 0 }
   0x5   :  { %19 = vsyncpa [#allocation7 + $0x1], 0  ;;  %s1048_s18 = smov 0   ;;  %s1050_s19 = smov 0  }
   0x6   :  { %s1052_s20 = smov 0   ;;  %s1054_s21 = smov 0  }
   0x7 LB: > { %s1069_s22 = sadd.s32 4294967295, %s1011_s21   ;;  %s800_s23 = sadd.s32 4294967294, %s1011_s21   ;;  %s1011_s21 = sphi %s1054_s21, %s1281_s21   ;;  %s1007_s20 = sphi %s1052_s20, %s1280_s20   ;;  %s1003_s19 = sphi %s1050_s19, %s1279_s19   ;;  %s999_s18 = sphi %s1048_s18, %s1278_s18  }
   0x8   : > { %s1073_s24 = sadd.s32 1, %s1011_s21   ;;  %s100_s25 = sadd.s32 1, %s1007_s20 }
   0x9   : > { %s97_s26 = ssub.s32 %s1011_s21, %s1073_s24  ;;  %p107_p0 = scmp.ne.s32.totalorder %s1007_s20, %s1003_s19 }
   0xa   : > { %p98_p1 = scmp.eq.s32.totalorder %s97_s26, 0  ;;  %p108_p2 = scmp.eq.s32.totalorder %s1011_s21, 0 }
   0xb   : > { %p113_p3 = scmp.ne.s32.totalorder %s1003_s19, %s999_s18  ;;  %p114_p4 = scmp.eq.s32.totalorder %s1069_s22, 0 }
   0xc   : > { %s1085_s27 = scalar_select %p98_p1, %s1007_s20, %s100_s25  }
   0xd   : > { %p1087_p5 = por %p108_p2, %p107_p0  ;;  %p1091_p6 = por %p114_p4, %p113_p3 }
   0xe   : > { %p137_p7 = scmp.eq.s32.totalorder %s1069_s22, 1  ;;  %p143_p8 = scmp.eq.s32.totalorder %s800_s23, 1 }
   0xf   : > { %s1267_s29 = scalar_select %p1091_p6, 1, 0 }
  0x10   : > { %p852_p10 = scmp.lt.s32.totalorder %s1011_s21, 2  ;;  %p1098_p11 = por %p137_p7, %p107_p0 }
  0x11   : > { %p1102_p12 = por %p143_p8, %p113_p3  ;;  %s204_s7 = sand.u32 1, %s1007_s20  }
  0x12   : > { %s1268_s30 = scalar_select %p1098_p11, 1, 0 }
  0x13   : > { %s1269_s6 = scalar_select %p1102_p12, 1, 0 }
  0x14   : > { %s832_s8 = sshll.u32 %s1011_s21, 7  ;;  %s803_s9 = sshll.u32 %s204_s7, 3 }
  0x15   : > { %s1111_s12 = scalar_lea.hbm %s1260_s3, %s832_s8  ;;  %s208_s13 = scalar_lea.vmem [#allocation2], %s803_s9 }
  0x16   : > { %s216_s14 = sshll.u32 %s208_s13, 4  ;;  %p1115_p13 = pnand %p852_p10, %p1087_p5  ;;  %s1119_s14 = int_to_ptr.vmem [resolvable:$true] %s216_s14 }
  0x17   : > { %s205_s16 = scalar_lea.sflag [#allocation3], %s204_s7  ;;  %s889_s17 = scalar_lea.hbm %s1111_s12, 128 }
  0x18   : > { %p890_p2 = scmp.ne.s32.totalorder %s1111_s12, %s889_s17  ;;  %p891_p3 = pneg %p1115_p13 }
  0x19   : > { %s894_s26 = scalar_lea.hbm %s1260_s3, 256  ;;  %p895_p5 = scmp.lt.s32.totalorder %s1111_s12, %s1260_s3 }
  0x1a   : > { %p892_p4 = pnand %p891_p3, %p890_p2  ;;  %p896_p8 = scmp.lt.s32.totalorder %s894_s26, %s889_s17 }
  0x1c   : > { %p893_p7 = pneg %p892_p4  ;;  %p897_p10 = por %p896_p8, %p895_p5 }
  0x1e   : > { %p898_p9 = pnand %p897_p10, %p893_p7 }
  0x20   : > { %901 = shalt.err (!%p898_p9)
}
  0x21   : > { %s902_s7 = scalar_lea.vmem %s1119_s14, 128  ;;  %s1013_s9 = smov [#allocation2]  }
  0x22   : > { %p903_p0 = scmp.ne.s32.totalorder %s1119_s14, %s902_s7  ;;  %s907_s10 = sshll.u32 %s1013_s9, 4  ;;  %s908_s10 = int_to_ptr.vmem [resolvable:$false] %s907_s10 }
  0x23   : > { %s909_s11 = scalar_lea.vmem %s908_s10, 256  ;;  %p910_p4 = scmp.lt.s32.totalorder %s1119_s14, %s908_s10 }
  0x24   : > { %p905_p1 = pnand %p903_p0, %p891_p3  ;;  %p911_p12 = scmp.lt.s32.totalorder %s909_s11, %s902_s7 }
  0x26   : > { %p906_p2 = pneg %p905_p1  ;;  %p912_p11 = por %p911_p12, %p910_p4 }
  0x28   : > { %p913_p6 = pnand %p912_p11, %p906_p2 }
  0x2a   : > { %916 = shalt.err (!%p913_p6)
}
  0x2b   : > { %844 = dma.hbm_to_vmem [thread:$0]  (!%p1115_p13), %s1111_s12, 128, %s1119_s14, %s205_s16  }
  0x2c   : > { %p1271_p9 = scmp.lt.s32.totalorder %s1011_s21, 3  ;;  %p1272_p7 = scmp.ge.s32.totalorder %s1011_s21, 1 }
  0x2e   : > { %p222_p0 = pnand %p1272_p7, %p1271_p9 }
  0x2f   : > { %s1146_s13 = sand.u32 (!%p222_p0), 1, %s1003_s19   ;;  %p1273_p6 = scmp.ne.s32.totalorder (!%p222_p0), %s1267_s29, 0 }
  0x30   : > { %225 = sbr.rel (%p222_p0) target bundleno = 308 (0x134), region = 36  ;;  %s1149_s17 = sshll.u32 (!%p222_p0), %s1146_s13, 3 }
  0x31   : > { %s228_s23 = scalar_lea.sflag (!%p222_p0), [#allocation3], %s1146_s13  ;;  %s231_s15 = scalar_lea.vmem (!%p222_p0), [#allocation2], %s1149_s17 }
  0x35   : > { %986 = dma.done.wait (%p1273_p6), %s228_s23, 128  }
  0x36   : > { %988 = vsyncadd (%p1273_p6), %s228_s23, 4294967168  ;;  %s810_s12 = sshll.u32 %s1069_s22, 2  ;;  %v284_v0 = vlaneseq  ;;  %v1014_v1 = vmov 1983009808   ;;  %v1015_v3 = vmov 0.0   ;;  %vm301_vm0 = vcmask 1041408  }
  0x37   : > { %p269_p11 = scmp.lt.s32.totalorder %s810_s12, 7  ;;  %v282_v2 = vunpack.c.l.s4 %v1014_v1  ;;  %374 = vmatprep.mubr.f32.mxu0 %v1015_v3  ;;  %445 = vmatprep.mubr.f32.mxu1 %v1015_v3  ;;  %v278_v12 = vld [vmem:[%s1257_s0] sm:$0x3]  ;;  %vm297_vm1 = vcmask 15360   ;;  %s833_s9 = sshll.u32 %s1069_s22, 7 }
  0x38   : > { %v285_v4 = vshrl.u32 %v284_v0, 7  ;;  %v476_v14 = vld [vmem:[%s1258_s1] sm:$0x3]  ;;  %s260_s10 = scalar_lea.vmem [#allocation5], %s1149_s17  ;;  %s1265_s16 = scalar_lea.vmem [#allocation6], %s1149_s17 }
  0x39   : > { %s1283_s12 = smov (!%p269_p11, %s810_s12), 7  ;;  %v283_v5 = vunpack.c.0.s8 %v282_v2  ;;  %s672_s11 = sshll.u32 %s260_s10, 4  ;;  %v622_v33 = vld [vmem:[%s231_s15] sm:$0xff]  ;;  %s1190_s11 = int_to_ptr.vmem [resolvable:$true] %s672_s11 }
  0x3a   : > { %s811_s14 = sshll.u32 %s1283_s12, 1  ;;  %v623_v37 = vmul.f32 0.9, %v622_v33  ;;  %s1195_s15 = sshll.u32 %s1265_s16, 4  ;;  %s687_s15 = int_to_ptr.vmem [resolvable:$true] %s1195_s15 }
  0x3b   : > { %v286_v6 = vsub.s32 %v283_v5, %v285_v4  ;;  %s272_s26 = scalar_lea.vmem %s1259_s2, %s811_s14  ;;  %s1188_s14 = scalar_lea.hbm %s1261_s4, %s833_s9 }
  0x3c   : > { %v277_v7 = vld [vmem:[%s272_s26] sm:$0xff]  ;;  %s653_s25 = scalar_lea.sflag [#allocation4], %s1146_s13  ;;  %s917_s26 = scalar_lea.vmem %s1190_s11, 128 }
  0x3d   : > { %v287_v8 = vrot.slane %v277_v7, %v286_v6  ;;  %v280_v9 = vcombine.high %v277_v7, %v277_v7  ;;  %p918_p12 = scmp.ne.s32.totalorder %s1190_s11, %s917_s26  ;;  %p1274_p13 = scmp.ne.s32.totalorder %s1268_s30, 0 }
  0x3e   : > { %s1016_s29 = smov [#allocation5]  }
  0x3f   : > { %v295_v10 = vcombine.high %v287_v8, %v287_v8  ;;  %v294_v11 = vrot.slane %v280_v9, %v286_v6  ;;  %p919_p1 = pnand %p918_p12, %p1274_p13  ;;  %s921_s28 = sshll.u32 %s1016_s29, 4  ;;  %s922_s28 = int_to_ptr.vmem [resolvable:$false] %s921_s28 }
  0x40   : > { %s923_s8 = scalar_lea.vmem %s922_s28, 256  ;;  %p924_p5 = scmp.lt.s32.totalorder %s1190_s11, %s922_s28 }
  0x41   : > { %812 = vmatprep.subr.msk.mxu0 %vm301_vm0, %v295_v10  ;;  %v296_v13 = vcombine.high %v294_v11, %v294_v11  ;;  %p920_p3 = pneg %p919_p1  ;;  %p925_p8 = scmp.lt.s32.totalorder %s923_s8, %s917_s26 }
  0x42   : > { %813 = vmatpush1.msk.msra.mxu0 %vm301_vm0, %v287_v8 }
  0x43   : > { %815 = vmatprep.subr.msk.mxu1 %vm301_vm0, %v296_v13  ;;  %814 = vmatmul.mubr.msk.f32.vlgmr.msra.gmra.mxu0 %vm297_vm1, %v278_v12  ;;  %p926_p10 = por %p925_p8, %p924_p5 }
  0x44   : > { %816 = vmatpush1.msk.msra.mxu1 %vm301_vm0, %v294_v11  ;;  %818 = vmatprep.subr.msk.mxu0 %vm301_vm0, %v295_v10 }
  0x45   : > { %817 = vmatmul.mubr.msk.f32.vlgmr.msra.gmra.mxu1 %vm297_vm1, %v278_v12  ;;  %821 = vmatprep.subr.msk.mxu1 %vm301_vm0, %v296_v13  ;;  %p927_p2 = pnand %p926_p10, %p920_p3 }
  0x46   : > { %819 = vmatpush1.msk.msra.mxu0 %vm301_vm0, %v287_v8  ;;  %822 = vmatpush1.msk.msra.mxu1 %vm301_vm0, %v294_v11 }
  0x47   : > { %544 = vmatprep.mubr.f32.mxu0 %v1015_v3  ;;  %615 = vmatprep.mubr.f32.mxu1 %v1015_v3 }
  0x48   : > { %820 = vmatmul.mubr.msk.f32.vlgmr.msra.gmra.mxu0 %vm297_vm1, %v476_v14 }
  0x49   : > { %823 = vmatmul.mubr.msk.f32.vlgmr.msra.gmra.mxu1 %vm297_vm1, %v476_v14 }
 0x103   : > { %v376_v15 = vpop.f32.mrf.mxu0 }
 0x105   : > { %v447_v16 = vpop.f32.mrf.mxu1  ;;  %v378_v17 = vpop.f32.mrf.mxu0 }
 0x106   : > { %v456_v18 = vcombine.low %v376_v15, %v378_v17 }
 0x107   : > { %v449_v19 = vpop.f32.mrf.mxu1 }
 0x108   : > { %v457_v20 = vcombine.low %v447_v16, %v449_v19  ;;  %v546_v21 = vpop.f32.mrf.mxu0  ;;  %v464_v24 = vrot.slane %v456_v18, %v286_v6 }
 0x109   : > { %v624_v22 = vmul.f32 0.1, %v546_v21  ;;  %v617_v23 = vpop.f32.mrf.mxu1 }
 0x10a   : > { %v471_v25 = vrot.slane %v457_v20, %v286_v6  ;;  %v548_v26 = vpop.f32.mrf.mxu0  ;;  %v626_v30 = vmul.f32 0.1, %v617_v23 }
 0x10b   : > { %v625_v27 = vmul.f32 0.1, %v548_v26  ;;  %v619_v28 = vpop.f32.mrf.mxu1 }
 0x10c   : > { %v472_v29 = vcombine.low %v464_v24, %v471_v25  ;;  %v627_v31 = vmul.f32 0.1, %v619_v28 }
 0x10d   : > { %v632_v32 = vcombine.low %v624_v22, %v625_v27 }
 0x10e   : > { %v474_v34 = vsub.f32 %v277_v7, %v472_v29  ;;  %v633_v35 = vcombine.low %v626_v30, %v627_v31 }
 0x10f   : > { %v640_v36 = vrot.slane %v632_v32, %v286_v6 }
 0x110   : > { %v647_v38 = vrot.slane %v633_v35, %v286_v6  ;;  %475 = vst [vmem:[%s260_s10] sm:$0xff] %v474_v34 }
 0x111   : > { %930 = shalt.err (!%p927_p2)
}
 0x112   : > { %s931_s7 = scalar_lea.hbm %s1188_s14, 128  ;;  %s935_s12 = scalar_lea.hbm %s1261_s4, 256 }
 0x113   : > { %p932_p4 = scmp.ne.s32.totalorder %s1188_s14, %s931_s7  ;;  %p936_p0 = scmp.lt.s32.totalorder %s1188_s14, %s1261_s4 }
 0x114   : > { %p937_p6 = scmp.lt.s32.totalorder %s935_s12, %s931_s7 }
 0x115   : > { %p933_p9 = pnand %p932_p4, %p1274_p13 }
 0x116   : > { %p938_p11 = por %p937_p6, %p936_p0 }
 0x117   : > { %p934_p7 = pneg %p933_p9 }
 0x119   : > { %p939_p12 = pnand %p938_p11, %p934_p7 }
 0x11b   : > { %942 = shalt.err (!%p939_p12)
}
 0x11c   : > { %837 = dma.vmem_to_hbm [thread:$0]  (%p1274_p13), %s1190_s11, 128, %s1188_s14, %s653_s25   ;;  %v648_v39 = vcombine.low %v640_v36, %v647_v38 }
 0x11d   : > { %s684_s28 = scalar_lea.hbm %s1262_s5, %s833_s9  ;;  %s1275_s8 = scalar_lea.vmem [#allocation6], %s1149_s17 }
 0x11e   : > { %v650_v40 = vadd.f32 %v648_v39, %v623_v37  ;;  %s658_s7 = scalar_lea.sflag [#allocation7], %s1146_s13  ;;  %s943_s10 = scalar_lea.vmem %s687_s15, 128 }
 0x11f   : > { %p944_p1 = scmp.ne.s32.totalorder %s687_s15, %s943_s10  ;;  %s1017_s23 = smov [#allocation6]  }
 0x120   : > { %651 = vst [vmem:[%s1275_s8] sm:$0xff] %v650_v40  ;;  %s947_s12 = sshll.u32 %s1017_s23, 4  ;;  %s948_s12 = int_to_ptr.vmem [resolvable:$false] %s947_s12 }
 0x121   : > { %p945_p3 = pnand %p944_p1, %p1274_p13  ;;  %s949_s11 = scalar_lea.vmem %s948_s12, 256 }
 0x122   : > { %p950_p8 = scmp.lt.s32.totalorder %s687_s15, %s948_s12  ;;  %p951_p10 = scmp.lt.s32.totalorder %s949_s11, %s943_s10 }
 0x123   : > { %p946_p5 = pneg %p945_p3 }
 0x124   : > { %p952_p2 = por %p951_p10, %p950_p8 }
 0x126   : > { %p953_p4 = pnand %p952_p2, %p946_p5 }
 0x128   : > { %956 = shalt.err (!%p953_p4)
}
 0x129   : > { %s957_s22 = scalar_lea.hbm %s684_s28, 128  ;;  %s961_s9 = scalar_lea.hbm %s1262_s5, 256 }
 0x12a   : > { %p958_p9 = scmp.ne.s32.totalorder %s684_s28, %s957_s22  ;;  %p962_p6 = scmp.lt.s32.totalorder %s684_s28, %s1262_s5 }
 0x12b   : > { %p963_p11 = scmp.lt.s32.totalorder %s961_s9, %s957_s22 }
 0x12c   : > { %p959_p7 = pnand %p958_p9, %p1274_p13 }
 0x12d   : > { %p964_p12 = por %p963_p11, %p962_p6 }
 0x12e   : > { %p960_p0 = pneg %p959_p7 }
 0x130   : > { %p965_p1 = pnand %p964_p12, %p960_p0 }
 0x132   : > { %968 = shalt.err (!%p965_p1)
}
 0x133   : > { %838 = dma.vmem_to_hbm [thread:$0]  (%p1274_p13), %s687_s15, 128, %s684_s28, %s658_s7  }
 0x134 PF: > { %s698_s29 = sand.u32 1, %s999_s18   ;;  %p1276_p3 = scmp.ne.s32.totalorder %s1269_s6, 0 }
 0x135   : > { %p1277_p5 = scmp.ge.s32.totalorder %s1011_s21, 2  ;;  %s699_s26 = scalar_lea.sflag [#allocation4], %s698_s29 }
 0x137   : > { %p846_p8 = pnand %p1277_p5, %p1276_p3 }
 0x139   : > { %p847_p10 = pneg %p846_p8 }
 0x13b   : > { %990 = dma.done.wait (%p847_p10), %s699_s26, 128  }
 0x13c   : > { %992 = vsyncadd (%p847_p10), %s699_s26, 4294967168  ;;  %s708_s16 = scalar_lea.sflag [#allocation7], %s698_s29 }
 0x13d   : > { %994 = dma.done.wait (%p847_p10), %s708_s16, 128  }
 0x13e   : > { %996 = vsyncadd (%p847_p10), %s708_s16, 4294967168  ;;  %p22_p13 = scmp.ge.s32.totalorder %s1073_s24, 4   ;;  %s1278_s18 = smov %s1003_s19 }
 0x13f   : > { %s1279_s19 = smov %s1007_s20  ;;  %s1280_s20 = smov %s1085_s27 }
 0x140   : > { %s1281_s21 = smov %s1073_s24  ;;  %24 = sbr.rel (!%p22_p13) target bundleno = 7 (0x7), region = 101 }
 0x145   :  { %713 = vsyncpa [#allocation3], 1 }
 0x146   :  { %715 = vsyncpa [#allocation3 + $0x1], 1 }
 0x147   :  { %716 = vsyncpa [#allocation4], 1 }
 0x148   :  { %718 = vsyncpa [#allocation4 + $0x1], 1 }
 0x149   :  { %719 = vsyncpa [#allocation7], 1 }
 0x14a   :  { %721 = vsyncpa [#allocation7 + $0x1], 1 }

</bundles_post_ra>
